<compile_context>
chip_gen: v6e
topology: v6e:2x2x1
jax: 0.10.0
libtpu: 0.0.40
codegen_flags: <defaults>
</compile_context>

<pallas_src>
import jax
import jax.numpy as jnp
import numpy as np
from jax.experimental import pallas as pl
from jax.experimental.pallas import tpu as pltpu

LAMBDA_DIRECTION = 1.0
_COS_EPS = 1e-8    # torch.nn.CosineSimilarity default eps
_EDIT_EPS = 1e-7   # eps added to edit-direction norm in clip_directional_loss
_TINY = _COS_EPS * _COS_EPS   # clamp for rsqrt args (squared-norm domain)


def _clip_directional_loss_kernel(idx_ref, src_ref, tgt_ref, w_ref, table_ref,
                                  out_ref, img_scr, txt_scr, lhs_scr):
    f32 = jnp.float32
    B, P = src_ref.shape          # batch, flattened pixels (static)
    D = w_ref.shape[1]            # feature dim
    R = idx_ref.shape[0]          # 2B + N gathered text rows
    N = R - 2 * B                 # number of negative classes

    def unit(x):
        # x * rsqrt(max(sum x^2, tiny)): exact EUP rsqrt, eps-guarded.
        return x * jax.lax.rsqrt(
            jnp.maximum(jnp.sum(x * x, axis=-1, keepdims=True), _TINY))

    # ---- in-kernel gather of pre-normalized text rows: [src; tgt; neg] ------
    # class indices live in SMEM; table rows are pulled with dynamic-start
    # pl.ds loads into a VMEM scratch slab (no XLA gather / concat outside).
    for i in range(R):                                     # static unroll, R small
        txt_scr[pl.ds(i, 1), :] = table_ref[pl.ds(idx_ref[i], 1), :]
    s = txt_scr[0:B, :]                                    # (B, D) source text
    t = txt_scr[B:2 * B, :]                                # (B, D) target text
    n = txt_scr[2 * B:2 * B + N, :]                        # (N, D) negative text
    txt_scr[2 * B + N:, :] = n * n                         # nsq block: RHS = [n; n^2]

    # ---- synthetic CLIP image encoder (single MXU weight push) --------------
    # TODO(synk): the real module runs a pretrained ViT-B/32 + preprocessing;
    # a deterministic linear projection stands in for it here.
    # Stack src/tgt into one (2B, P) slab via scratch-ref sub-block stores
    # (no concatenate), cast to bf16 at the dot, f32 accumulation.
    img_scr[0:B, :] = src_ref[...]
    img_scr[B:2 * B, :] = tgt_ref[...]
    feats = jnp.dot(img_scr[...].astype(jnp.bfloat16), w_ref[...],
                    preferred_element_type=f32)            # (2B, D)
    feats = unit(feats)                                    # get_image_features(norm=True)
    diff = feats[B:] - feats[:B]                           # target_enc - src_enc

    # edit direction: (tgt - src) / (||tgt - src|| + 1e-7), exact sqrt + divide
    nrm = jnp.sqrt(jnp.sum(diff * diff, axis=-1, keepdims=True))     # (B, 1)
    edit = diff / (nrm + _EDIT_EPS)                                   # (B, D)

    # target_direction = normalize(t - s); logit_target = <td, edit>.
    # ||td||, ||edit|| are 1 - O(1e-7), so the max(||td||*||edit||, eps)
    # cosine denominator is dropped (error << the 1e-3 check tolerance).
    td = unit(t - s)                                                  # (B, D)
    logit_t = jnp.sum(td * edit, axis=-1, keepdims=True)              # (B, 1)

    # ---- negative directions (torch broadcast layout, never materialised) ---
    # torch: nd[b, d, j] = n[j, d] - s[b, d], normalised over j (dim=-1),
    #        cosine with edit over d (dim=1).
    # Per-(b,d) normaliser over j as an exact unrolled sum (avoids the
    # cancellation-prone sn2 - 2*s*sn1 + N*s^2 rearrangement).
    # TODO(synk): for large N switch to a closed form / MXU contraction here.
    denom_sq = jnp.zeros_like(s)                                      # (B, D)
    for j in range(N):
        dj = n[j:j + 1, :] - s                                        # (B, D)
        denom_sq = denom_sq + dj * dj
    inv = jax.lax.rsqrt(jnp.maximum(denom_sq, _TINY))                 # (B, D)
    inv2 = inv * inv

    # Contractions over D fused into ONE MXU push/pop:
    #   LHS (3B, D) = [inv*edit ; s*inv2 ; inv2],  RHS (2N, D) = [n ; n^2]
    #   result (3B, 2N); needed blocks un/svn/i2n2, off-diagonal blocks free.
    u = inv * edit                                                    # (B, D)
    sv = s * inv2                                                     # (B, D)
    lhs_scr[0:B, :] = u
    lhs_scr[B:2 * B, :] = sv
    lhs_scr[2 * B:3 * B, :] = inv2
    dn = (((1,), (1,)), ((), ()))               # contract dim 1 of both (A @ B.T)
    mm = jax.lax.dot_general(lhs_scr[...], txt_scr[2 * B:, :], dn,
                             preferred_element_type=f32)              # (3B, 2N)
    un = mm[0:B, 0:N]                 # (inv*edit) @ n.T
    svn = mm[B:2 * B, 0:N]            # (s*inv^2)  @ n.T
    i2n2 = mm[2 * B:3 * B, N:2 * N]   # inv^2      @ (n^2).T

    c1 = jnp.sum(s * u, axis=-1, keepdims=True)                       # (B, 1)
    c2 = jnp.sum(s * sv, axis=-1, keepdims=True)                      # (B, 1)

    dot_n = un - c1                                # sum_d nd_norm * edit     (B, N)
    nd_nsq = i2n2 - 2.0 * svn + c2                 # ||nd_norm[b,:,j]||_d^2   (B, N)
    # logit_negative = dot_n / max(||nd||_d * ||edit||, eps), ||edit|| ~ 1
    logit_n = dot_n * jax.lax.rsqrt(jnp.maximum(nd_nsq, _TINY))

    # -log( e^lt / (e^lt + sum_j e^ln_j) ) = log(pp + pn) - lt  (exact identity)
    pp = jnp.exp(logit_t)                                             # (B, 1)
    pn = jnp.sum(jnp.exp(logit_n), axis=-1, keepdims=True)            # (B, 1)
    nll = jnp.log(pp + pn) - logit_t                                  # (B, 1)

    out_ref[...] = jnp.sum(nll, axis=0, keepdims=True) * (1.0 / B)    # (1, 1)


def clip_directional_loss_pallas(class_idx, src_f32, tgt_f32, w_img_bf16,
                                 text_table_f32):
    """class_idx: (2B+N,) int32 [src;tgt;neg] class rows; src/tgt: (B, P) f32
    flattened images; w_img_bf16: (P, D) bf16; text_table_f32: (C, D) f32
    pre-normalized per-class text features."""
    B, P = src_f32.shape
    D = w_img_bf16.shape[1]
    R = class_idx.shape[0]
    N = R - 2 * B
    C = text_table_f32.shape[0]

    flops = 2 * (2 * B) * P * D + 2 * (3 * B) * D * (2 * N)
    bytes_accessed = 2 * B * P * 4 + P * D * 2 + C * D * 4 + R * 4 + 4
    transcendentals = B * D + 6 * B + B * (N + 1)   # rsqrt over (B,D) dominates

    # TODO(synk): when the synthetic encoder is replaced by real ViT-B/32-scale
    # weights, switch to a K-tiled grid with an f32 VMEM accumulator, size the
    # tile against v7x's 64 MiB physical VMEM (2 inputs x 2 pipeline buffers)
    # and set pltpu.CompilerParams(vmem_limit_bytes=...) explicitly; only add a
    # cross-TensorCore "parallel" grid axis once per-core work exceeds a few
    # microseconds, and amortize the MXU weight push by stacking multiple
    # micro-batches of image rows per call on the 256-wide v6e/v7x arrays.
    vmem = pltpu.MemorySpace.VMEM
    out = pl.pallas_call(
        _clip_directional_loss_kernel,
        out_shape=jax.ShapeDtypeStruct((1, 1), jnp.float32),
        in_specs=[pl.BlockSpec(memory_space=pltpu.MemorySpace.SMEM),  # class idx
                  pl.BlockSpec(memory_space=vmem),                    # src images
                  pl.BlockSpec(memory_space=vmem),                    # tgt images
                  pl.BlockSpec(memory_space=vmem),                    # encoder W
                  pl.BlockSpec(memory_space=vmem)],                   # text table
        out_specs=pl.BlockSpec(memory_space=vmem),
        scratch_shapes=[pltpu.VMEM((2 * B, P), jnp.float32),          # stacked imgs
                        pltpu.VMEM((2 * B + 2 * N, D), jnp.float32),  # [s;t;n;n^2]
                        pltpu.VMEM((3 * B, D), jnp.float32)],         # merged-mm LHS
        cost_estimate=pl.CostEstimate(flops=flops,
                                      transcendentals=transcendentals,
                                      bytes_accessed=bytes_accessed),
    )(class_idx, src_f32, tgt_f32, w_img_bf16, text_table_f32)
    return out[0, 0]


class CLIPLossPallas:
    """JAX/Pallas analogue of CLIPLoss.forward (lambda_direction branch)."""

    def __init__(self, class_names, feature_dim=128, img_shape=(3, 16, 16),
                 lambda_direction=1.0, key=None):
        if key is None:
            key = jax.random.PRNGKey(0)
        k_txt, k_w = jax.random.split(key)
        self.class_names = list(class_names)
        self.class_to_idx = {c: i for i, c in enumerate(self.class_names)}
        self.feature_dim = feature_dim
        self.lambda_direction = lambda_direction
        c, h, w = img_shape
        p = c * h * w
        # deterministic synthetic "text encoder" (per-class embedding table),
        # L2-normalized ONCE here == precompute_text_features(norm=True).
        raw = jax.random.normal(k_txt, (len(self.class_names), feature_dim),
                                dtype=jnp.float32)
        self.text_table = raw / jnp.linalg.norm(raw, axis=-1, keepdims=True)
        # deterministic synthetic "image encoder" (linear projection), stored
        # bf16 so the dominant weight DMA/MXU feed is half-width; f32 accumulate.
        self.w_img = (jax.random.normal(k_w, (p, feature_dim), dtype=jnp.float32)
                      / np.sqrt(p)).astype(jnp.bfloat16)

    def _class_indices(self, classes):
        return np.array([self.class_to_idx[c] for c in classes], dtype=np.int32)

    def _text_features(self, classes):
        # Used only by the host-side reference check; the kernel gathers
        # table rows itself from the SMEM index vector.
        return self.text_table[jnp.asarray(self._class_indices(classes))]

    def forward(self, src_img, source_class, target_img, target_class,
                negative_class, texture_image=None):
        clip_loss = 0.0
        if self.lambda_direction:
            b = src_img.shape[0]
            # single tiny int32 operand; images go in as f32 (reshape of
            # contiguous NCHW is a free view) -- bf16 cast + stacking + the
            # text gather/concat all happen inside the kernel.
            idx = jnp.asarray(np.concatenate([
                self._class_indices(source_class),
                self._class_indices(target_class),
                self._class_indices(negative_class)]))
            direction_loss = clip_directional_loss_pallas(
                idx, src_img.reshape(b, -1), target_img.reshape(b, -1),
                self.w_img, self.text_table)
            clip_loss = clip_loss + self.lambda_direction * direction_loss
        return clip_loss


def _reference_loss(src_flat_bf16, tgt_flat_bf16, w_bf16, s_txt, t_txt, n_txt):
    """Plain-JAX reference mirroring the torch layout/math exactly
    (bf16 encoder inputs with f32 accumulation, same as the kernel)."""
    def nrm(x, axis=-1, keepdims=True):
        return jnp.linalg.norm(x, axis=axis, keepdims=keepdims)

    src = jnp.dot(src_flat_bf16, w_bf16, preferred_element_type=jnp.float32)
    tgt = jnp.dot(tgt_flat_bf16, w_bf16, preferred_element_type=jnp.float32)
    src = src / nrm(src)
    tgt = tgt / nrm(tgt)
    s = s_txt / nrm(s_txt)
    t = t_txt / nrm(t_txt)
    n = n_txt / nrm(n_txt)
    td = t - s
    td = td / nrm(td)
    nd = n.T[None, :, :] - s[:, :, None]            # (B, D, N)  torch layout
    nd = nd / nrm(nd, axis=-1)
    edit = tgt - src
    edit = edit / (nrm(edit) + _EDIT_EPS)
    logit_t = jnp.sum(td * edit, -1) / jnp.maximum(
        jnp.linalg.norm(td, axis=-1) * jnp.linalg.norm(edit, axis=-1), _COS_EPS)
    nd_n = jnp.linalg.norm(nd, axis=1)              # (B, N)
    dot_n = jnp.sum(nd * edit[:, :, None], axis=1)  # (B, N)
    logit_n = dot_n / jnp.maximum(
        nd_n * jnp.linalg.norm(edit, axis=-1, keepdims=True), _COS_EPS)
    pp = jnp.exp(logit_t)
    pn = jnp.sum(jnp.exp(logit_n), -1)
    p = pp / (pp + pn)
    return jnp.mean(-jnp.log(p))


if __name__ == "__main__":
    B, C, H, W, D = 4, 3, 16, 16, 128
    key = jax.random.PRNGKey(0)
    k_model, k_src, k_tgt = jax.random.split(key, 3)

    classes = ["cat", "dog", "sketch", "painting"]
    loss_mod = CLIPLossPallas(classes, feature_dim=D, img_shape=(C, H, W),
                              lambda_direction=LAMBDA_DIRECTION, key=k_model)

    # images in [-1, 1] (what the module's preprocess expects), NCHW, f32
    src_img = jax.random.uniform(k_src, (B, C, H, W), dtype=jnp.float32,
                                 minval=-1.0, maxval=1.0)
    target_img = jax.random.uniform(k_tgt, (B, C, H, W), dtype=jnp.float32,
                                    minval=-1.0, maxval=1.0)

    source_class = ["cat"] * B
    target_class = ["dog"] * B
    negative_class = ["sketch", "painting", "sketch", "painting"]

    loss = loss_mod.forward(src_img, source_class, target_img, target_class,
                            negative_class)
    loss = jax.block_until_ready(loss)

    # correctness check against a plain-JAX reference of the torch math
    ref = LAMBDA_DIRECTION * _reference_loss(
        src_img.reshape(B, -1).astype(jnp.bfloat16),
        target_img.reshape(B, -1).astype(jnp.bfloat16),
        loss_mod.w_img,
        loss_mod._text_features(source_class),
        loss_mod._text_features(target_class),
        loss_mod._text_features(negative_class))
    assert np.allclose(float(loss), float(ref), rtol=1e-3, atol=1e-5), \
        (float(loss), float(ref))

    print("KERNEL_OK")
</pallas_src>

<mosaic_0001>
module attributes {stable_mosaic.version = 11 : i64} {
  func.func @_clip_directional_loss_kernel(%arg0: memref<12xi32, #tpu.memory_space<smem>>, %arg1: memref<4x768xf32, #tpu.memory_space<vmem>>, %arg2: memref<4x768xf32, #tpu.memory_space<vmem>>, %arg3: memref<768x128xbf16, #tpu.memory_space<vmem>>, %arg4: memref<4x128xf32, #tpu.memory_space<vmem>>, %arg5: memref<1x1xf32, #tpu.memory_space<vmem>>, %arg6: memref<8x768xf32, #tpu.memory_space<vmem>>, %arg7: memref<16x128xf32, #tpu.memory_space<vmem>>, %arg8: memref<12x128xf32, #tpu.memory_space<vmem>>) attributes {dimension_semantics = [], scalar_prefetch = 0 : i64, scratch_operands = 3 : i64, tpu.core_type = #tpu.core_type<tc>} {
    %c0 = arith.constant 0 : index
    %0 = memref.load %arg0[%c0] : memref<12xi32, #tpu.memory_space<smem>>
    %1 = arith.index_cast %0 : i32 to index
    %c0_0 = arith.constant 0 : index
    %2 = vector.load %arg4[%1, %c0_0] : memref<4x128xf32, #tpu.memory_space<vmem>>, vector<1x128xf32>
    %c0_1 = arith.constant 0 : index
    %c0_2 = arith.constant 0 : index
    %3 = vector.load %arg7[%c0_1, %c0_2] : memref<16x128xf32, #tpu.memory_space<vmem>>, vector<1x128xf32>
    tpu.vector_store %arg7[%c0_1, %c0_2], %2 {strides = array<i32>} : memref<16x128xf32, #tpu.memory_space<vmem>>, vector<1x128xf32>,
    %c1 = arith.constant 1 : index
    %4 = memref.load %arg0[%c1] : memref<12xi32, #tpu.memory_space<smem>>
    %5 = arith.index_cast %4 : i32 to index
    %c0_3 = arith.constant 0 : index
    %6 = vector.load %arg4[%5, %c0_3] : memref<4x128xf32, #tpu.memory_space<vmem>>, vector<1x128xf32>
    %c1_4 = arith.constant 1 : index
    %c0_5 = arith.constant 0 : index
    %7 = vector.load %arg7[%c1_4, %c0_5] : memref<16x128xf32, #tpu.memory_space<vmem>>, vector<1x128xf32>
    tpu.vector_store %arg7[%c1_4, %c0_5], %6 {strides = array<i32>} : memref<16x128xf32, #tpu.memory_space<vmem>>, vector<1x128xf32>,
    %c2 = arith.constant 2 : index
    %8 = memref.load %arg0[%c2] : memref<12xi32, #tpu.memory_space<smem>>
    %9 = arith.index_cast %8 : i32 to index
    %c0_6 = arith.constant 0 : index
    %10 = vector.load %arg4[%9, %c0_6] : memref<4x128xf32, #tpu.memory_space<vmem>>, vector<1x128xf32>
    %c2_7 = arith.constant 2 : index
    %c0_8 = arith.constant 0 : index
    %11 = vector.load %arg7[%c2_7, %c0_8] : memref<16x128xf32, #tpu.memory_space<vmem>>, vector<1x128xf32>
    tpu.vector_store %arg7[%c2_7, %c0_8], %10 {strides = array<i32>} : memref<16x128xf32, #tpu.memory_space<vmem>>, vector<1x128xf32>,
    %c3 = arith.constant 3 : index
    %12 = memref.load %arg0[%c3] : memref<12xi32, #tpu.memory_space<smem>>
    %13 = arith.index_cast %12 : i32 to index
    %c0_9 = arith.constant 0 : index
    %14 = vector.load %arg4[%13, %c0_9] : memref<4x128xf32, #tpu.memory_space<vmem>>, vector<1x128xf32>
    %c3_10 = arith.constant 3 : index
    %c0_11 = arith.constant 0 : index
    %15 = vector.load %arg7[%c3_10, %c0_11] : memref<16x128xf32, #tpu.memory_space<vmem>>, vector<1x128xf32>
    tpu.vector_store %arg7[%c3_10, %c0_11], %14 {strides = array<i32>} : memref<16x128xf32, #tpu.memory_space<vmem>>, vector<1x128xf32>,
    %c4 = arith.constant 4 : index
    %16 = memref.load %arg0[%c4] : memref<12xi32, #tpu.memory_space<smem>>
    %17 = arith.index_cast %16 : i32 to index
    %c0_12 = arith.constant 0 : index
    %18 = vector.load %arg4[%17, %c0_12] : memref<4x128xf32, #tpu.memory_space<vmem>>, vector<1x128xf32>
    %c4_13 = arith.constant 4 : index
    %c0_14 = arith.constant 0 : index
    %19 = vector.load %arg7[%c4_13, %c0_14] : memref<16x128xf32, #tpu.memory_space<vmem>>, vector<1x128xf32>
    tpu.vector_store %arg7[%c4_13, %c0_14], %18 {strides = array<i32>} : memref<16x128xf32, #tpu.memory_space<vmem>>, vector<1x128xf32>,
    %c5 = arith.constant 5 : index
    %20 = memref.load %arg0[%c5] : memref<12xi32, #tpu.memory_space<smem>>
    %21 = arith.index_cast %20 : i32 to index
    %c0_15 = arith.constant 0 : index
    %22 = vector.load %arg4[%21, %c0_15] : memref<4x128xf32, #tpu.memory_space<vmem>>, vector<1x128xf32>
    %c5_16 = arith.constant 5 : index
    %c0_17 = arith.constant 0 : index
    %23 = vector.load %arg7[%c5_16, %c0_17] : memref<16x128xf32, #tpu.memory_space<vmem>>, vector<1x128xf32>
    tpu.vector_store %arg7[%c5_16, %c0_17], %22 {strides = array<i32>} : memref<16x128xf32, #tpu.memory_space<vmem>>, vector<1x128xf32>,
    %c6 = arith.constant 6 : index
    %24 = memref.load %arg0[%c6] : memref<12xi32, #tpu.memory_space<smem>>
    %25 = arith.index_cast %24 : i32 to index
    %c0_18 = arith.constant 0 : index
    %26 = vector.load %arg4[%25, %c0_18] : memref<4x128xf32, #tpu.memory_space<vmem>>, vector<1x128xf32>
    %c6_19 = arith.constant 6 : index
    %c0_20 = arith.constant 0 : index
    %27 = vector.load %arg7[%c6_19, %c0_20] : memref<16x128xf32, #tpu.memory_space<vmem>>, vector<1x128xf32>
    tpu.vector_store %arg7[%c6_19, %c0_20], %26 {strides = array<i32>} : memref<16x128xf32, #tpu.memory_space<vmem>>, vector<1x128xf32>,
    %c7 = arith.constant 7 : index
    %28 = memref.load %arg0[%c7] : memref<12xi32, #tpu.memory_space<smem>>
    %29 = arith.index_cast %28 : i32 to index
    %c0_21 = arith.constant 0 : index
    %30 = vector.load %arg4[%29, %c0_21] : memref<4x128xf32, #tpu.memory_space<vmem>>, vector<1x128xf32>
    %c7_22 = arith.constant 7 : index
    %c0_23 = arith.constant 0 : index
    %31 = vector.load %arg7[%c7_22, %c0_23] : memref<16x128xf32, #tpu.memory_space<vmem>>, vector<1x128xf32>
    tpu.vector_store %arg7[%c7_22, %c0_23], %30 {strides = array<i32>} : memref<16x128xf32, #tpu.memory_space<vmem>>, vector<1x128xf32>,
    %c8 = arith.constant 8 : index
    %32 = memref.load %arg0[%c8] : memref<12xi32, #tpu.memory_space<smem>>
    %33 = arith.index_cast %32 : i32 to index
    %c0_24 = arith.constant 0 : index
    %34 = vector.load %arg4[%33, %c0_24] : memref<4x128xf32, #tpu.memory_space<vmem>>, vector<1x128xf32>
    %c8_25 = arith.constant 8 : index
    %c0_26 = arith.constant 0 : index
    %35 = vector.load %arg7[%c8_25, %c0_26] : memref<16x128xf32, #tpu.memory_space<vmem>>, vector<1x128xf32>
    tpu.vector_store %arg7[%c8_25, %c0_26], %34 {strides = array<i32>} : memref<16x128xf32, #tpu.memory_space<vmem>>, vector<1x128xf32>,
    %c9 = arith.constant 9 : index
    %36 = memref.load %arg0[%c9] : memref<12xi32, #tpu.memory_space<smem>>
    %37 = arith.index_cast %36 : i32 to index
    %c0_27 = arith.constant 0 : index
    %38 = vector.load %arg4[%37, %c0_27] : memref<4x128xf32, #tpu.memory_space<vmem>>, vector<1x128xf32>
    %c9_28 = arith.constant 9 : index
    %c0_29 = arith.constant 0 : index
    %39 = vector.load %arg7[%c9_28, %c0_29] : memref<16x128xf32, #tpu.memory_space<vmem>>, vector<1x128xf32>
    tpu.vector_store %arg7[%c9_28, %c0_29], %38 {strides = array<i32>} : memref<16x128xf32, #tpu.memory_space<vmem>>, vector<1x128xf32>,
    %c10 = arith.constant 10 : index
    %40 = memref.load %arg0[%c10] : memref<12xi32, #tpu.memory_space<smem>>
    %41 = arith.index_cast %40 : i32 to index
    %c0_30 = arith.constant 0 : index
    %42 = vector.load %arg4[%41, %c0_30] : memref<4x128xf32, #tpu.memory_space<vmem>>, vector<1x128xf32>
    %c10_31 = arith.constant 10 : index
    %c0_32 = arith.constant 0 : index
    %43 = vector.load %arg7[%c10_31, %c0_32] : memref<16x128xf32, #tpu.memory_space<vmem>>, vector<1x128xf32>
    tpu.vector_store %arg7[%c10_31, %c0_32], %42 {strides = array<i32>} : memref<16x128xf32, #tpu.memory_space<vmem>>, vector<1x128xf32>,
    %c11 = arith.constant 11 : index
    %44 = memref.load %arg0[%c11] : memref<12xi32, #tpu.memory_space<smem>>
    %45 = arith.index_cast %44 : i32 to index
    %c0_33 = arith.constant 0 : index
    %46 = vector.load %arg4[%45, %c0_33] : memref<4x128xf32, #tpu.memory_space<vmem>>, vector<1x128xf32>
    %c11_34 = arith.constant 11 : index
    %c0_35 = arith.constant 0 : index
    %47 = vector.load %arg7[%c11_34, %c0_35] : memref<16x128xf32, #tpu.memory_space<vmem>>, vector<1x128xf32>
    tpu.vector_store %arg7[%c11_34, %c0_35], %46 {strides = array<i32>} : memref<16x128xf32, #tpu.memory_space<vmem>>, vector<1x128xf32>,
    %c0_36 = arith.constant 0 : index
    %c0_37 = arith.constant 0 : index
    %48 = vector.load %arg7[%c0_36, %c0_37] : memref<16x128xf32, #tpu.memory_space<vmem>>, vector<4x128xf32>
    %c4_38 = arith.constant 4 : index
    %c0_39 = arith.constant 0 : index
    %49 = vector.load %arg7[%c4_38, %c0_39] : memref<16x128xf32, #tpu.memory_space<vmem>>, vector<4x128xf32>
    %c8_40 = arith.constant 8 : index
    %c0_41 = arith.constant 0 : index
    %50 = vector.load %arg7[%c8_40, %c0_41] : memref<16x128xf32, #tpu.memory_space<vmem>>, vector<4x128xf32>
    %51 = arith.mulf %50, %50 : vector<4x128xf32>
    %c12 = arith.constant 12 : index
    %c0_42 = arith.constant 0 : index
    %52 = vector.load %arg7[%c12, %c0_42] : memref<16x128xf32, #tpu.memory_space<vmem>>, vector<4x128xf32>
    tpu.vector_store %arg7[%c12, %c0_42], %51 {strides = array<i32>} : memref<16x128xf32, #tpu.memory_space<vmem>>, vector<4x128xf32>,
    %c0_43 = arith.constant 0 : index
    %c0_44 = arith.constant 0 : index
    %53 = vector.load %arg1[%c0_43, %c0_44] : memref<4x768xf32, #tpu.memory_space<vmem>>, vector<4x768xf32>
    %c0_45 = arith.constant 0 : index
    %c0_46 = arith.constant 0 : index
    %54 = vector.load %arg6[%c0_45, %c0_46] : memref<8x768xf32, #tpu.memory_space<vmem>>, vector<4x768xf32>
    tpu.vector_store %arg6[%c0_45, %c0_46], %53 {strides = array<i32>} : memref<8x768xf32, #tpu.memory_space<vmem>>, vector<4x768xf32>,
    %c0_47 = arith.constant 0 : index
    %c0_48 = arith.constant 0 : index
    %55 = vector.load %arg2[%c0_47, %c0_48] : memref<4x768xf32, #tpu.memory_space<vmem>>, vector<4x768xf32>
    %c4_49 = arith.constant 4 : index
    %c0_50 = arith.constant 0 : index
    %56 = vector.load %arg6[%c4_49, %c0_50] : memref<8x768xf32, #tpu.memory_space<vmem>>, vector<4x768xf32>
    tpu.vector_store %arg6[%c4_49, %c0_50], %55 {strides = array<i32>} : memref<8x768xf32, #tpu.memory_space<vmem>>, vector<4x768xf32>,
    %c0_51 = arith.constant 0 : index
    %c0_52 = arith.constant 0 : index
    %57 = vector.load %arg6[%c0_51, %c0_52] : memref<8x768xf32, #tpu.memory_space<vmem>>, vector<8x768xf32>
    %58 = arith.truncf %57 : vector<8x768xf32> to vector<8x768xbf16>
    %c0_53 = arith.constant 0 : index
    %c0_54 = arith.constant 0 : index
    %59 = vector.load %arg3[%c0_53, %c0_54] : memref<768x128xbf16, #tpu.memory_space<vmem>>, vector<768x128xbf16>
    %cst = arith.constant dense<0.000000e+00> : vector<8x128xf32>
    %60 = tpu.matmul %58, %59, %cst {dimension_numbers = #tpu.dot_dimension_numbers<[1], [0], [0], [1], [0, 0, 1, 1], [], []>} : vector<8x768xbf16>, vector<768x128xbf16>, vector<8x128xf32> -> vector<8x128xf32>
    %61 = arith.mulf %60, %60 : vector<8x128xf32>
    %cst_55 = arith.constant dense<0.000000e+00> : vector<8xf32>
    %62 = vector.multi_reduction <add>, %61, %cst_55 [1] : vector<8x128xf32> to vector<8xf32>
    %63 = vector.shape_cast %62 : vector<8xf32> to vector<8x1xf32>
    %cst_56 = arith.constant 1.000000e-16 : f32
    %64 = vector.broadcast %cst_56 : f32 to vector<8x1xf32>
    %65 = arith.maximumf %63, %64 : vector<8x1xf32>
    %66 = math.rsqrt %65 : vector<8x1xf32>
    %67 = vector.broadcast %66 : vector<8x1xf32> to vector<8x128xf32>
    %68 = arith.mulf %60, %67 : vector<8x128xf32>
    %69 = vector.extract_strided_slice %68 {offsets = [4, 0], sizes = [4, 128], strides = [1, 1]} : vector<8x128xf32> to vector<4x128xf32>
    %70 = vector.extract_strided_slice %68 {offsets = [0, 0], sizes = [4, 128], strides = [1, 1]} : vector<8x128xf32> to vector<4x128xf32>
    %71 = arith.subf %69, %70 : vector<4x128xf32>
    %72 = arith.mulf %71, %71 : vector<4x128xf32>
    %cst_57 = arith.constant dense<0.000000e+00> : vector<4xf32>
    %73 = vector.multi_reduction <add>, %72, %cst_57 [1] : vector<4x128xf32> to vector<4xf32>
    %74 = vector.shape_cast %73 : vector<4xf32> to vector<4x1xf32>
    %75 = math.sqrt %74 : vector<4x1xf32>
    %cst_58 = arith.constant 1.000000e-07 : f32
    %76 = vector.broadcast %cst_58 : f32 to vector<4x1xf32>
    %77 = arith.addf %75, %76 : vector<4x1xf32>
    %78 = vector.broadcast %77 : vector<4x1xf32> to vector<4x128xf32>
    %79 = arith.divf %71, %78 : vector<4x128xf32>
    %80 = arith.subf %49, %48 : vector<4x128xf32>
    %81 = arith.mulf %80, %80 : vector<4x128xf32>
    %cst_59 = arith.constant dense<0.000000e+00> : vector<4xf32>
    %82 = vector.multi_reduction <add>, %81, %cst_59 [1] : vector<4x128xf32> to vector<4xf32>
    %83 = vector.shape_cast %82 : vector<4xf32> to vector<4x1xf32>
    %cst_60 = arith.constant 1.000000e-16 : f32
    %84 = vector.broadcast %cst_60 : f32 to vector<4x1xf32>
    %85 = arith.maximumf %83, %84 : vector<4x1xf32>
    %86 = math.rsqrt %85 : vector<4x1xf32>
    %87 = vector.broadcast %86 : vector<4x1xf32> to vector<4x128xf32>
    %88 = arith.mulf %80, %87 : vector<4x128xf32>
    %89 = arith.mulf %88, %79 : vector<4x128xf32>
    %cst_61 = arith.constant dense<0.000000e+00> : vector<4xf32>
    %90 = vector.multi_reduction <add>, %89, %cst_61 [1] : vector<4x128xf32> to vector<4xf32>
    %91 = vector.shape_cast %90 : vector<4xf32> to vector<4x1xf32>
    %cst_62 = arith.constant 0.000000e+00 : f32
    %92 = vector.broadcast %cst_62 : f32 to vector<4x128xf32>
    %93 = vector.extract_strided_slice %50 {offsets = [0, 0], sizes = [1, 128], strides = [1, 1]} : vector<4x128xf32> to vector<1x128xf32>
    %94 = vector.broadcast %93 : vector<1x128xf32> to vector<4x128xf32>
    %95 = arith.subf %94, %48 : vector<4x128xf32>
    %96 = arith.mulf %95, %95 : vector<4x128xf32>
    %97 = arith.addf %92, %96 : vector<4x128xf32>
    %98 = vector.extract_strided_slice %50 {offsets = [1, 0], sizes = [1, 128], strides = [1, 1]} : vector<4x128xf32> to vector<1x128xf32>
    %99 = vector.broadcast %98 : vector<1x128xf32> to vector<4x128xf32>
    %100 = arith.subf %99, %48 : vector<4x128xf32>
    %101 = arith.mulf %100, %100 : vector<4x128xf32>
    %102 = arith.addf %97, %101 : vector<4x128xf32>
    %103 = vector.extract_strided_slice %50 {offsets = [2, 0], sizes = [1, 128], strides = [1, 1]} : vector<4x128xf32> to vector<1x128xf32>
    %104 = vector.broadcast %103 : vector<1x128xf32> to vector<4x128xf32>
    %105 = arith.subf %104, %48 : vector<4x128xf32>
    %106 = arith.mulf %105, %105 : vector<4x128xf32>
    %107 = arith.addf %102, %106 : vector<4x128xf32>
    %108 = vector.extract_strided_slice %50 {offsets = [3, 0], sizes = [1, 128], strides = [1, 1]} : vector<4x128xf32> to vector<1x128xf32>
    %109 = vector.broadcast %108 : vector<1x128xf32> to vector<4x128xf32>
    %110 = arith.subf %109, %48 : vector<4x128xf32>
    %111 = arith.mulf %110, %110 : vector<4x128xf32>
    %112 = arith.addf %107, %111 : vector<4x128xf32>
    %cst_63 = arith.constant 1.000000e-16 : f32
    %113 = vector.broadcast %cst_63 : f32 to vector<4x128xf32>
    %114 = arith.maximumf %112, %113 : vector<4x128xf32>
    %115 = math.rsqrt %114 : vector<4x128xf32>
    %116 = arith.mulf %115, %115 : vector<4x128xf32>
    %117 = arith.mulf %115, %79 : vector<4x128xf32>
    %118 = arith.mulf %48, %116 : vector<4x128xf32>
    %c0_64 = arith.constant 0 : index
    %c0_65 = arith.constant 0 : index
    %119 = vector.load %arg8[%c0_64, %c0_65] : memref<12x128xf32, #tpu.memory_space<vmem>>, vector<4x128xf32>
    tpu.vector_store %arg8[%c0_64, %c0_65], %117 {strides = array<i32>} : memref<12x128xf32, #tpu.memory_space<vmem>>, vector<4x128xf32>,
    %c4_66 = arith.constant 4 : index
    %c0_67 = arith.constant 0 : index
    %120 = vector.load %arg8[%c4_66, %c0_67] : memref<12x128xf32, #tpu.memory_space<vmem>>, vector<4x128xf32>
    tpu.vector_store %arg8[%c4_66, %c0_67], %118 {strides = array<i32>} : memref<12x128xf32, #tpu.memory_space<vmem>>, vector<4x128xf32>,
    %c8_68 = arith.constant 8 : index
    %c0_69 = arith.constant 0 : index
    %121 = vector.load %arg8[%c8_68, %c0_69] : memref<12x128xf32, #tpu.memory_space<vmem>>, vector<4x128xf32>
    tpu.vector_store %arg8[%c8_68, %c0_69], %116 {strides = array<i32>} : memref<12x128xf32, #tpu.memory_space<vmem>>, vector<4x128xf32>,
    %c0_70 = arith.constant 0 : index
    %c0_71 = arith.constant 0 : index
    %122 = vector.load %arg8[%c0_70, %c0_71] : memref<12x128xf32, #tpu.memory_space<vmem>>, vector<12x128xf32>
    %c8_72 = arith.constant 8 : index
    %c0_73 = arith.constant 0 : index
    %123 = vector.load %arg7[%c8_72, %c0_73] : memref<16x128xf32, #tpu.memory_space<vmem>>, vector<8x128xf32>
    %cst_74 = arith.constant dense<0.000000e+00> : vector<12x8xf32>
    %124 = tpu.matmul %122, %123, %cst_74 {dimension_numbers = #tpu.dot_dimension_numbers<[1], [1], [0], [0], [0, 0, 1, 0], [], []>} : vector<12x128xf32>, vector<8x128xf32>, vector<12x8xf32> -> vector<12x8xf32>
    %125 = vector.extract_strided_slice %124 {offsets = [0, 0], sizes = [4, 4], strides = [1, 1]} : vector<12x8xf32> to vector<4x4xf32>
    %126 = vector.extract_strided_slice %124 {offsets = [4, 0], sizes = [4, 4], strides = [1, 1]} : vector<12x8xf32> to vector<4x4xf32>
    %127 = vector.extract_strided_slice %124 {offsets = [8, 4], sizes = [4, 4], strides = [1, 1]} : vector<12x8xf32> to vector<4x4xf32>
    %128 = arith.mulf %48, %117 : vector<4x128xf32>
    %cst_75 = arith.constant dense<0.000000e+00> : vector<4xf32>
    %129 = vector.multi_reduction <add>, %128, %cst_75 [1] : vector<4x128xf32> to vector<4xf32>
    %130 = vector.shape_cast %129 : vector<4xf32> to vector<4x1xf32>
    %131 = arith.mulf %48, %118 : vector<4x128xf32>
    %cst_76 = arith.constant dense<0.000000e+00> : vector<4xf32>
    %132 = vector.multi_reduction <add>, %131, %cst_76 [1] : vector<4x128xf32> to vector<4xf32>
    %133 = vector.shape_cast %132 : vector<4xf32> to vector<4x1xf32>
    %134 = vector.broadcast %130 : vector<4x1xf32> to vector<4x4xf32>
    %135 = arith.subf %125, %134 : vector<4x4xf32>
    %cst_77 = arith.constant 2.000000e+00 : f32
    %136 = vector.broadcast %cst_77 : f32 to vector<4x4xf32>
    %137 = arith.mulf %136, %126 : vector<4x4xf32>
    %138 = arith.subf %127, %137 : vector<4x4xf32>
    %139 = vector.broadcast %133 : vector<4x1xf32> to vector<4x4xf32>
    %140 = arith.addf %138, %139 : vector<4x4xf32>
    %cst_78 = arith.constant 1.000000e-16 : f32
    %141 = vector.broadcast %cst_78 : f32 to vector<4x4xf32>
    %142 = arith.maximumf %140, %141 : vector<4x4xf32>
    %143 = math.rsqrt %142 : vector<4x4xf32>
    %144 = arith.mulf %135, %143 : vector<4x4xf32>
    %145 = math.exp %91 : vector<4x1xf32>
    %146 = math.exp %144 : vector<4x4xf32>
    %cst_79 = arith.constant dense<0.000000e+00> : vector<4xf32>
    %147 = vector.multi_reduction <add>, %146, %cst_79 [1] : vector<4x4xf32> to vector<4xf32>
    %148 = vector.shape_cast %147 : vector<4xf32> to vector<4x1xf32>
    %149 = arith.addf %145, %148 : vector<4x1xf32>
    %150 = math.log %149 : vector<4x1xf32>
    %151 = arith.subf %150, %91 : vector<4x1xf32>
    %cst_80 = arith.constant dense<0.000000e+00> : vector<1xf32>
    %152 = vector.multi_reduction <add>, %151, %cst_80 [0] : vector<4x1xf32> to vector<1xf32>
    %153 = vector.shape_cast %152 : vector<1xf32> to vector<1x1xf32>
    %cst_81 = arith.constant 2.500000e-01 : f32
    %154 = vector.broadcast %cst_81 : f32 to vector<1x1xf32>
    %155 = arith.mulf %153, %154 : vector<1x1xf32>
    %c0_82 = arith.constant 0 : index
    %c0_83 = arith.constant 0 : index
    %156 = vector.load %arg5[%c0_82, %c0_83] : memref<1x1xf32, #tpu.memory_space<vmem>>, vector<1x1xf32>
    tpu.vector_store %arg5[%c0_82, %c0_83], %155 {strides = array<i32>} : memref<1x1xf32, #tpu.memory_space<vmem>>, vector<1x1xf32>,
    return
  }
}

</mosaic_0001>

<bundles_post_ra>
// kernel: tpu_custom_call.1
= control target key start
LH: loop header
LB: loop body
LE: loop exit
PB: predicated region body
PF: predicated region fallthrough
CT: control target
= control target key end

     0   :  { %10 = vsyncpa [#allocation8], 0  ;;  %s1330_s0 = inlined_call_operand.hbm [shape: s32[12], index: 0, kind: input, shape index: {}]   ;;  %s1331_s1 = inlined_call_operand.hbm [shape: f32[4,768], index: 1, kind: input, shape index: {}]   ;;  %s1332_s2 = inlined_call_operand.hbm [shape: f32[4,768], index: 2, kind: input, shape index: {}]   ;;  %s1333_s3 = inlined_call_operand.hbm [shape: bf16[768,128], index: 3, kind: input, shape index: {}]   ;;  %s1334_s4 = inlined_call_operand.vmem [shape: f32[4,128], index: 4, kind: input, shape index: {}]   ;;  %s1335_s5 = inlined_call_operand.hbm [shape: f32[1,1], index: 5, kind: output, shape index: {}]  }
   0x1   :  { %11 = vsyncpa [#allocation6], 0 }
   0x2   :  { %12 = vsyncpa [#allocation11], 0 }
   0x3   :  { %13 = vsyncpa [#allocation7], 0  ;;  %s1214_s18 = smov [#allocation10]   ;;  %s1215_s20 = smov [#allocation9]  }
   0x4   :  { %s38_s19 = sshll.u32 %s1214_s18, 4  ;;  %s28_s21 = sshll.u32 %s1215_s20, 4  ;;  %s39_s19 = int_to_ptr.vmem [resolvable:$true] %s38_s19  ;;  %s29_s21 = int_to_ptr.vmem [resolvable:$true] %s28_s21 }
   0x5   :  { %s1126_s22 = scalar_lea.vmem %s39_s19, 384  ;;  %p1131_p1 = scmp.lt.s32.totalorder %s39_s19, %s39_s19 }
   0x6   :  { %p1127_p0 = scmp.ne.s32.totalorder %s39_s19, %s1126_s22  ;;  %p1132_p2 = scmp.lt.s32.totalorder %s1126_s22, %s1126_s22 }
   0x8   :  { %p1133_p3 = por %p1132_p2, %p1131_p1 }
   0xa   :  { %p1134_p4 = pnand %p1133_p3, %p1127_p0 }
   0xc   :  { %1137 = shalt.err (!%p1134_p4)
}
   0xd   :  { %41 = dma.hbm_to_vmem [thread:$0]  %s1332_s2, 384, %s39_s19, [#allocation11]  }
   0xe   :  { %s1216_s25 = smov [#allocation5]   ;;  %s1154_s28 = scalar_lea.vmem %s29_s21, 384 }
   0xf   :  { %21 = dma.hbm_to_smem %s1330_s0, 16, %s1216_s25, [#allocation8]  }
  0x10   :  { %p1155_p5 = scmp.ne.s32.totalorder %s29_s21, %s1154_s28  ;;  %p1159_p6 = scmp.lt.s32.totalorder %s29_s21, %s29_s21 }
  0x11   :  { %p1160_p7 = scmp.lt.s32.totalorder %s1154_s28, %s1154_s28 }
  0x13   :  { %p1161_p8 = por %p1160_p7, %p1159_p6 }
  0x15   :  { %p1162_p9 = pnand %p1161_p8, %p1155_p5 }
  0x17   :  { %1165 = shalt.err (!%p1162_p9)
}
  0x18   :  { %31 = dma.hbm_to_vmem [thread:$0]  %s1331_s1, 384, %s29_s21, [#allocation6]  }
  0x19   :  { %s1217_s6 = smov [#allocation12]  }
  0x1a   :  { %s47_s7 = sshll.u32 %s1217_s6, 4  ;;  %s48_s7 = int_to_ptr.vmem [resolvable:$true] %s47_s7 }
  0x1b   :  { %s1174_s2 = scalar_lea.vmem %s48_s7, 6144  ;;  %p1179_p11 = scmp.lt.s32.totalorder %s48_s7, %s48_s7 }
  0x1c   :  { %p1175_p10 = scmp.ne.s32.totalorder %s48_s7, %s1174_s2  ;;  %p1180_p12 = scmp.lt.s32.totalorder %s1174_s2, %s1174_s2 }
  0x1e   :  { %p1181_p13 = por %p1180_p12, %p1179_p11 }
  0x20   :  { %p1182_p0 = pnand %p1181_p13, %p1175_p10 }
  0x22   :  { %1185 = shalt.err (!%p1182_p0)
}
  0x23   :  { %s1218_s0 = smov 64   ;;  %s1219_s8 = smov 4  }
  0x24   :  { %53 = dma.hbm_to_vmem [thread:$0]  %s1333_s3, 6144, %s48_s7, [#allocation11], %s1218_s0, %s1218_s0, %s1219_s8  }
  0x25   :  { %1206 = dma.done.wait [#allocation8], 16  }
  0x26   :  { %1207 = vsyncadd [#allocation8], 4294967280 }
  0x27   :  { %1208 = dma.done.wait [#allocation6], 384  }
  0x28   :  { %1209 = vsyncadd [#allocation6], 4294966912 }
  0x29   :  { %1210 = dma.done.wait [#allocation11], 6528  }
  0x2a   :  { %1211 = vsyncadd [#allocation11], 4294960768 }
  0x2b   :  { %68 = sfence }
  0x2c   :  { %v1046_v0 = vld [vmem:[#allocation12 + $0x78] sm:$0xff]   ;;  %v1050_v4 = vld [vmem:[#allocation12 + $0x70] sm:$0xff]   ;;  %v1054_v8 = vld [vmem:[#allocation12 + $0x68] sm:$0xff]   ;;  %s70_s1 = sld [smem:[#allocation5]]  ;;  %vm686_vm0 = vcmask 1047556   ;;  %vm702_vm1 = vcmask 1043456  }
  0x2d   :  { %v1047_v1 = vld [vmem:[#allocation12 + $0xf8] sm:$0xff]   ;;  %964 = vmatprep.subr.bf16.mxu0 %v1046_v0  ;;  %v1051_v5 = vld [vmem:[#allocation12 + $0xf0] sm:$0xff]   ;;  %v1055_v9 = vld [vmem:[#allocation12 + $0xe8] sm:$0xff]   ;;  %s905_s3 = sld [smem:[#allocation5 + $0x1]]  ;;  %vm858_vm4 = vcmask 27648   ;;  %vm874_vm5 = vcmask 0  }
  0x2e   :  { %v1048_v2 = vld [vmem:[#allocation12 + $0x38] sm:$0xff]   ;;  %986 = vmatprep.subr.bf16.mxu1 %v1047_v1  ;;  %v1052_v6 = vld [vmem:[#allocation12 + $0x30] sm:$0xff]   ;;  %v1056_v10 = vld [vmem:[#allocation12 + $0x28] sm:$0xff]   ;;  %s906_s11 = sld [smem:[#allocation5 + $0x2]] }
  0x2f   :  { %v1049_v3 = vld [vmem:[#allocation12 + $0xb8] sm:$0xff]   ;;  %965 = vmatpush3.bf16.msra.mxu0 %v1048_v2  ;;  %v1053_v7 = vld [vmem:[#allocation12 + $0xb0] sm:$0xff]   ;;  %v1057_v11 = vld [vmem:[#allocation12 + $0xa8] sm:$0xff]   ;;  %s907_s12 = sld [smem:[#allocation5 + $0x3]] }
  0x30   :  { %987 = vmatpush3.bf16.msra.mxu1 %v1049_v3  ;;  %966 = vmatprep.subr.bf16.mxu0 %v1050_v4  ;;  %v1058_v12 = vld [vmem:[#allocation12 + $0x60] sm:$0xff]   ;;  %v1062_v16 = vld [vmem:[#allocation12 + $0x58] sm:$0xff]   ;;  %v1066_v20 = vld [vmem:[#allocation12 + $0x50] sm:$0xff]   ;;  %s908_s13 = sld [smem:[#allocation5 + $0x4]] }
  0x31   :  { %988 = vmatprep.subr.bf16.mxu1 %v1051_v5  ;;  %v1059_v13 = vld [vmem:[#allocation12 + $0xe0] sm:$0xff]   ;;  %v1063_v17 = vld [vmem:[#allocation12 + $0xd8] sm:$0xff]   ;;  %v1067_v21 = vld [vmem:[#allocation12 + $0xd0] sm:$0xff]   ;;  %s909_s14 = sld [smem:[#allocation5 + $0x5]] }
  0x32   :  { %v1060_v14 = vld [vmem:[#allocation12 + $0x20] sm:$0xff]   ;;  %v1064_v18 = vld [vmem:[#allocation12 + $0x18] sm:$0xff]   ;;  %v1068_v22 = vld [vmem:[#allocation12 + $0x10] sm:$0xff]   ;;  %s71_s17 = scalar_lea.vmem %s1334_s4, %s70_s1  ;;  %s910_s18 = sld [smem:[#allocation5 + $0x6]] }
  0x33   :  { %967 = vmatpush3.bf16.msra.mxu0 %v1052_v6  ;;  %v1061_v15 = vld [vmem:[#allocation12 + $0xa0] sm:$0xff]   ;;  %v1065_v19 = vld [vmem:[#allocation12 + $0x98] sm:$0xff]   ;;  %v1069_v23 = vld [vmem:[#allocation12 + $0x90] sm:$0xff]   ;;  %s75_s21 = scalar_lea.vmem %s1334_s4, %s905_s3  ;;  %s911_s22 = sld [smem:[#allocation5 + $0x7]] }
  0x34   :  { %989 = vmatpush3.bf16.msra.mxu1 %v1053_v7  ;;  %968 = vmatprep.subr.bf16.mxu0 %v1054_v8  ;;  %v1070_v24 = vld [vmem:[#allocation12 + $0x48] sm:$0xff]   ;;  %v1074_v28 = vld [vmem:[#allocation12 + $0x40] sm:$0xff]   ;;  %v123_v32 = vld [vmem:[#allocation9] sm:$0xff]  ;;  %s79_s25 = scalar_lea.vmem %s1334_s4, %s906_s11  ;;  %s914_s15 = sld [smem:[#allocation5 + $0xa]] }
  0x35   :  { %990 = vmatprep.subr.bf16.mxu1 %v1055_v9  ;;  %v1071_v25 = vld [vmem:[#allocation12 + $0xc8] sm:$0xff]   ;;  %v1075_v29 = vld [vmem:[#allocation12 + $0xc0] sm:$0xff]   ;;  %v124_v34 = vld [vmem:[#allocation9 + $0x8] sm:$0xff]  ;;  %v129_v35 = vcombine.high %v123_v32, %v123_v32  ;;  %135 = vst [vmem:[#allocation2 + $0x28] sm:$0xf] %v123_v32  ;;  %s83_s28 = scalar_lea.vmem %s1334_s4, %s907_s12  ;;  %s915_s16 = sld [smem:[#allocation5 + $0xb]] }
  0x36   :  { %v1072_v26 = vld [vmem:[#allocation12 + $0x8] sm:$0xff]   ;;  %v1076_v30 = vld [vmem:[#allocation12] sm:$0xff]   ;;  %v130_v37 = vcombine.high %v124_v34, %v124_v34  ;;  %137 = vst [vmem:[#allocation2 + $0x8] sm:$0xf] %v124_v34  ;;  %v142_v38 = vld [vmem:[#allocation10 + $0x8] sm:$0xff]  ;;  %s87_s6 = scalar_lea.vmem %s1334_s4, %s908_s13  ;;  %s912_s13 = sld [smem:[#allocation5 + $0x8]] }
  0x37   :  { %969 = vmatpush3.bf16.msra.mxu0 %v1056_v10  ;;  %v1073_v27 = vld [vmem:[#allocation12 + $0x88] sm:$0xff]   ;;  %v1077_v31 = vld [vmem:[#allocation12 + $0x80] sm:$0xff]   ;;  %v148_v39 = vcombine.low %v142_v38, %v142_v38  ;;  %156 = vst [vmem:[#allocation2] sm:$0xf0] %v142_v38  ;;  %v1082_v40 = vld [vmem:[#allocation12 + $0x178] sm:$0xff]   ;;  %s91_s0 = scalar_lea.vmem %s1334_s4, %s909_s14  ;;  %s913_s14 = sld [smem:[#allocation5 + $0x9]] }
  0x38   :  { %991 = vmatpush3.bf16.msra.mxu1 %v1057_v11  ;;  %970 = vmatprep.subr.bf16.mxu0 %v1058_v12  ;;  %v141_v33 = vld [vmem:[#allocation10] sm:$0xff]  ;;  %136 = vst [vmem:[#allocation2 + $0x10] sm:$0xf] %v129_v35  ;;  %138 = vst [vmem:[#allocation2] sm:$0xf] %v130_v37  ;;  %v1083_v48 = vld [vmem:[#allocation12 + $0x138] sm:$0xff]   ;;  %s95_s1 = scalar_lea.vmem %s1334_s4, %s910_s18 }
  0x39   :  { %992 = vmatprep.subr.bf16.mxu1 %v1059_v13  ;;  %v147_v36 = vcombine.low %v141_v33, %v141_v33  ;;  %154 = vst [vmem:[#allocation2 + $0x10] sm:$0xf0] %v141_v33  ;;  %155 = vst [vmem:[#allocation2 + $0x8] sm:$0xf0] %v148_v39  ;;  %v1084_v50 = vld [vmem:[#allocation12 + $0x170] sm:$0xff]   ;;  %v1086_v52 = vld [vmem:[#allocation12 + $0x168] sm:$0xff]   ;;  %s99_s12 = scalar_lea.vmem %s1334_s4, %s911_s22 }
  0x3a   :  { %v1085_v51 = vld [vmem:[#allocation12 + $0x130] sm:$0xff]   ;;  %v125_v53 = vld [vmem:[#allocation9 + $0x10] sm:$0xff]  ;;  %v1087_v54 = vld [vmem:[#allocation12 + $0x128] sm:$0xff]  }
  0x3b   :  { %971 = vmatpush3.bf16.msra.mxu0 %v1060_v14  ;;  %153 = vst [vmem:[#allocation2 + $0x28] sm:$0xf0] %v147_v36  ;;  %v131_v55 = vcombine.high %v125_v53, %v125_v53  ;;  %139 = vst [vmem:[#allocation2 + $0x18] sm:$0xf] %v125_v53  ;;  %v143_v56 = vld [vmem:[#allocation10 + $0x10] sm:$0xff]  ;;  %v1088_v57 = vld [vmem:[#allocation12 + $0x160] sm:$0xff]  }
  0x3c   :  { %993 = vmatpush3.bf16.msra.mxu1 %v1061_v15  ;;  %972 = vmatprep.subr.bf16.mxu0 %v1062_v16  ;;  %v149_v58 = vcombine.low %v143_v56, %v143_v56  ;;  %158 = vst [vmem:[#allocation2 + $0x20] sm:$0xf0] %v143_v56  ;;  %v1089_v59 = vld [vmem:[#allocation12 + $0x120] sm:$0xff]   ;;  %v1090_v60 = vld [vmem:[#allocation12 + $0x158] sm:$0xff]   ;;  %v1092_v62 = vld [vmem:[#allocation12 + $0x150] sm:$0xff]   ;;  %s103_s19 = scalar_lea.vmem %s1334_s4, %s912_s13 }
  0x3d   :  { %994 = vmatprep.subr.bf16.mxu1 %v1063_v17  ;;  %140 = vst [vmem:[#allocation2 + $0x20] sm:$0xf] %v131_v55  ;;  %v1091_v61 = vld [vmem:[#allocation12 + $0x118] sm:$0xff]   ;;  %v1093_v1 = vld [vmem:[#allocation12 + $0x110] sm:$0xff]   ;;  %v1094_v2 = vld [vmem:[#allocation12 + $0x148] sm:$0xff]   ;;  %s107_s22 = scalar_lea.vmem %s1334_s4, %s913_s14 }
  0x3e   :  { %157 = vst [vmem:[#allocation2 + $0x18] sm:$0xf0] %v149_v58  ;;  %v1095_v3 = vld [vmem:[#allocation12 + $0x108] sm:$0xff]   ;;  %v1096_v4 = vld [vmem:[#allocation12 + $0x140] sm:$0xff]  }
  0x3f   :  { %973 = vmatpush3.bf16.msra.mxu0 %v1064_v18  ;;  %v162_v42 = vld [vmem:[#allocation2] sm:$0xff] }
  0x40   :  { %995 = vmatpush3.bf16.msra.mxu1 %v1065_v19  ;;  %974 = vmatprep.subr.bf16.mxu0 %v1066_v20  ;;  %v160_v41 = vld [vmem:[#allocation2 + $0x10] sm:$0xff]  ;;  %v168_v45 = vpack.c.bf16 %v162_v42, %v162_v42  ;;  %v161_v47 = vld [vmem:[#allocation2 + $0x8] sm:$0xff]  ;;  %v1097_v5 = vld [vmem:[#allocation12 + $0x100] sm:$0xff]  }
  0x41   :  { %996 = vmatprep.subr.bf16.mxu1 %v1067_v21  ;;  %v166_v44 = vpack.c.bf16 %v160_v41, %v160_v41  ;;  %v167_v49 = vpack.c.bf16 %v161_v47, %v161_v47  ;;  %v96_v32 = vld [vmem:[%s95_s1] sm:$0x1] }
  0x42   :  { %v159_v43 = vld [vmem:[#allocation2 + $0x28] sm:$0xff]  ;;  %627 = vmatprep.mubr.bf16.mxu1 %v168_v45  ;;  %97 = vst [vmem:[#allocation3 + $0x6] sm:$0x1] %v96_v32  ;;  %v100_v33 = vld [vmem:[%s99_s12] sm:$0x1] }
  0x43   :  { %975 = vmatpush3.bf16.msra.mxu0 %v1068_v22  ;;  %v165_v46 = vpack.c.bf16 %v159_v43, %v159_v43  ;;  %587 = vmatprep.mubr.bf16.mxu0 %v166_v44  ;;  %101 = vst [vmem:[#allocation3 + $0x7] sm:$0x1] %v100_v33  ;;  %v104_v47 = vld [vmem:[%s103_s19] sm:$0x1] }
  0x44   :  { %997 = vmatpush3.bf16.msra.mxu1 %v1069_v23  ;;  %976 = vmatprep.subr.bf16.mxu0 %v1070_v24  ;;  %v164_v63 = vld [vmem:[#allocation2 + $0x20] sm:$0xff]  ;;  %105 = vst [vmem:[#allocation3 + $0x8] sm:$0x1] %v104_v47 }
  0x45   :  { %998 = vmatprep.subr.bf16.mxu1 %v1071_v25  ;;  %v170_v0 = vpack.c.bf16 %v164_v63, %v164_v63  ;;  %v163_v6 = vld [vmem:[#allocation2 + $0x18] sm:$0xff] }
  0x46   :  { %v169_v7 = vpack.c.bf16 %v163_v6, %v163_v6 }
  0x47   :  { %977 = vmatpush3.bf16.msra.mxu0 %v1072_v26  ;;  %v72_v26 = vld [vmem:[%s71_s17] sm:$0x1] }
  0x48   :  { %999 = vmatpush3.bf16.msra.mxu1 %v1073_v27  ;;  %978 = vmatprep.subr.bf16.mxu0 %v1074_v28  ;;  %73 = vst [vmem:[#allocation3] sm:$0x1] %v72_v26  ;;  %v76_v27 = vld [vmem:[%s75_s21] sm:$0x1] }
  0x49   :  { %1000 = vmatprep.subr.bf16.mxu1 %v1075_v29  ;;  %77 = vst [vmem:[#allocation3 + $0x1] sm:$0x1] %v76_v27  ;;  %v80_v28 = vld [vmem:[%s79_s25] sm:$0x1]  ;;  %s111_s25 = scalar_lea.vmem %s1334_s4, %s914_s15 }
  0x4a   :  { %81 = vst [vmem:[#allocation3 + $0x2] sm:$0x1] %v80_v28  ;;  %v84_v29 = vld [vmem:[%s83_s28] sm:$0x1]  ;;  %s115_s28 = scalar_lea.vmem %s1334_s4, %s915_s16  ;;  %s1220_s4 = smov 124  }
  0x4b   :  { %979 = vmatpush3.bf16.msra.mxu0 %v1076_v30  ;;  %85 = vst [vmem:[#allocation3 + $0x3] sm:$0x1] %v84_v29  ;;  %v88_v30 = vld [vmem:[%s87_s6] sm:$0x1] }
  0x4c   :  { %1001 = vmatpush3.bf16.msra.mxu1 %v1077_v31  ;;  %1008 = vmatprep.subr.bf16.mxu0 %v1082_v40  ;;  %89 = vst [vmem:[#allocation3 + $0x4] sm:$0x1] %v88_v30  ;;  %v92_v31 = vld [vmem:[%s91_s0] sm:$0x1] }
  0x4d   :  { %93 = vst [vmem:[#allocation3 + $0x5] sm:$0x1] %v92_v31 }
  0x4e   :  { %588 = vmatmul.mubr.bf16.vlgmr.msra.gmra.mxu0 %v165_v46 }
  0x4f   :  { %628 = vmatmul.mubr.bf16.vlgmr.msra.gmra.mxu1 %v167_v49  ;;  %1009 = vmatpush3.bf16.msra.mxu0 %v1083_v48  ;;  %v108_v48 = vld [vmem:[%s107_s22] sm:$0x1] }
  0x50   :  { %1010 = vmatprep.subr.bf16.mxu0 %v1084_v50  ;;  %667 = vmatprep.mubr.bf16.mxu0 %v170_v0  ;;  %109 = vst [vmem:[#allocation3 + $0x9] sm:$0x1] %v108_v48  ;;  %v112_v49 = vld [vmem:[%s111_s25] sm:$0x1] }
  0x51   :  { %113 = vst [vmem:[#allocation3 + $0xa] sm:$0x1] %v112_v49  ;;  %v116_v50 = vld [vmem:[%s115_s28] sm:$0x1] }
  0x52   :  { %v1289_v37 = vld [vmem:[#allocation3] sm:$0xf]  ;;  %117 = vst [vmem:[#allocation3 + $0xb] sm:$0x1] %v116_v50 }
  0x53   :  { %1011 = vmatpush3.bf16.msra.mxu0 %v1085_v51  ;;  %v716_v51 = vlaneseq }
  0x54   :  { %1012 = vmatprep.subr.bf16.mxu0 %v1086_v52  ;;  %v119_v38 = vld [vmem:[#allocation3 + $0x4] sm:$0xf] }
  0x55   :  { %v1292_v41 = vsub.f32 %v119_v38, %v1289_v37  ;;  %v717_v52 = vshrl.u32 %v716_v51, 7 }
  0x57   :  { %1013 = vmatpush3.bf16.msra.mxu0 %v1087_v54  ;;  %v701_v44 = vmul.f32 %v1292_v41, %v1292_v41  ;;  %v718_v53 = vsub.s32 0, %v717_v52  ;;  %v725_v54 = vsub.s32 1, %v717_v52  ;;  %v732_v55 = vsub.s32 2, %v717_v52 }
  0x58   :  { %1014 = vmatprep.subr.bf16.mxu0 %v1088_v57  ;;  %v739_v57 = vsub.s32 3, %v717_v52 }
  0x59   :  { %v703_v46 = vsel %vm702_vm1, %v701_v44, 0.0  ;;  %v120_v56 = vld [vmem:[#allocation3 + $0x8] sm:$0xf] }
  0x5a   :  { %v719_v58 = vrot.slane %v120_v56, %v718_v53 }
  0x5b   :  { %1015 = vmatpush3.bf16.msra.mxu0 %v1089_v59  ;;  %v726_v59 = vrot.slane %v120_v56, %v725_v54 }
  0x5c   :  { %1016 = vmatprep.subr.bf16.mxu0 %v1090_v60  ;;  %v733_v60 = vrot.slane %v120_v56, %v732_v55 }
  0x5d   :  { %v727_v63 = vsub.f32 %v726_v59, %v1289_v37 }
  0x5e   :  { %v734_v0 = vsub.f32 %v733_v60, %v1289_v37 }
  0x5f   :  { %1017 = vmatpush3.bf16.msra.mxu0 %v1091_v61  ;;  %v740_v61 = vrot.slane %v120_v56, %v739_v57 }
  0x60   :  { %1018 = vmatprep.subr.bf16.mxu0 %v1092_v62  ;;  %v720_v62 = vsub.f32 %v719_v58, %v1289_v37 }
  0x63   :  { %1019 = vmatpush3.bf16.msra.mxu0 %v1093_v1  ;;  %v741_v1 = vsub.f32 %v740_v61, %v1289_v37 }
  0x64   :  { %1020 = vmatprep.subr.bf16.mxu0 %v1094_v2  ;;  %v721_v2 = vmul.f32 %v720_v62, %v720_v62 }
  0x65   :  { %v742_v6 = vmul.f32 %v741_v1, %v741_v1 }
  0x67   :  { %1021 = vmatpush3.bf16.msra.mxu0 %v1095_v3  ;;  %v728_v3 = vmul.f32 %v727_v63, %v727_v63 }
  0x68   :  { %1022 = vmatprep.subr.bf16.mxu0 %v1096_v4  ;;  %v735_v4 = vmul.f32 %v734_v0, %v734_v0 }
  0x6b   :  { %1023 = vmatpush3.bf16.msra.mxu0 %v1097_v5  ;;  %v729_v5 = vadd.f32 %v728_v3, %v721_v2 }
  0x6e   :  { %668 = vmatmul.mubr.bf16.vlgmr.msra.gmra.mxu0 %v169_v7  ;;  %v736_v7 = vadd.f32 %v735_v4, %v729_v5 }
 0x10e   :  { %v980_v8 = vpop.f32.mrf.mxu0 }
 0x10f   :  { %v1002_v9 = vpop.f32.mrf.mxu1 }
 0x110   :  { %v981_v10 = vpop.f32.mrf.mxu0 }
 0x111   :  { %v1003_v11 = vpop.f32.mrf.mxu1  ;;  %v982_v16 = vadd.f32 %v981_v10, %v980_v8  ;;  %v121_v8 = vmul.f32 %v120_v56, %v120_v56 }
 0x112   :  { %v983_v12 = vpop.f32.mrf.mxu0  ;;  %v1004_v17 = vadd.f32 %v1003_v11, %v1002_v9  ;;  %v743_v9 = vadd.f32 %v742_v6, %v736_v7 }
 0x113   :  { %v1005_v13 = vpop.f32.mrf.mxu1  ;;  %122 = vst [vmem:[#allocation3 + $0xc] sm:$0xf] %v121_v8 }
 0x114   :  { %v984_v14 = vpop.f32.mrf.mxu0  ;;  %v630_v20 = vadd.f32 %v1004_v17, %v982_v16  ;;  %v744_v10 = vmax.f32 %v743_v9, 1e-16 }
 0x115   :  { %v1006_v15 = vpop.f32.mrf.mxu1 }
 0x11a   :  { %v754_v11 = vld [vmem:[#allocation3 + $0x8] sm:$0xff] }
 0x11b   :  { %1033 = vmatprep.subr.mxu1 %v754_v11 }
 0x11c   :  { %1034 = vmatpush3.xpose.msra.mxu1 %v754_v11 }
 0x12e   :  { %v1024_v18 = vpop.f32.mrf.mxu0 }
 0x130   :  { %v1025_v19 = vpop.f32.mrf.mxu0 }
 0x131   :  { %v1026_v21 = vadd.f32 %v1025_v19, %v1024_v18 }
 0x132   :  { %v1027_v22 = vpop.f32.mrf.mxu0 }
 0x133   :  { %v670_v23 = vadd.f32 %v1026_v21, %v630_v20 }
 0x134   :  { %v1028_v24 = vpop.f32.mrf.mxu0 }
 0x135   :  { %v675_v25 = vmul.f32 %v670_v23, %v670_v23 }
 0x137   :  { %676 = vadd.xlane.f32.xlu0 %v675_v25 }
 0x1c0   :  { %v677_v34 = vpop.xlane.xlu0 %676 }
 0x1c1   :  { %v678_v35 = vmax.f32 %v677_v34, 1e-16 }
 0x1c3   :  { %1100 = vrsqrt.f32 %v678_v35 }
 0x1c4   :  { %1102 = vrsqrt.f32 %v744_v10 }
 0x1d0   :  { %v1101_v36 = vpop.eup %1100 }
 0x1d1   :  { %v680_v39 = vmul.f32 %v1101_v36, %v670_v23  ;;  %v1103_v12 = vpop.eup %1102 }
 0x1d2   :  { %v746_v13 = vmul.f32 %v1103_v12, %v1103_v12 }
 0x1d3   :  { %v682_v40 = vrot.slane %v680_v39, 4 }
 0x1d4   :  { %v748_v14 = vmul.f32 %v746_v13, %v1289_v37  ;;  %751 = vst [vmem:[#allocation4 + $0x8] sm:$0xf] %v746_v13 }
 0x1d5   :  { %v1294_v42 = vsub.f32 %v680_v39, %v682_v40 }
 0x1d6   :  { %750 = vst [vmem:[#allocation4 + $0x4] sm:$0xf] %v748_v14  ;;  %v834_v30 = vmul.f32 %v748_v14, %v1289_v37 }
 0x1d7   :  { %v685_v43 = vmul.f32 %v1294_v42, %v1294_v42 }
 0x1d8   :  { %v835_v31 = vsel %vm702_vm1, %v834_v30, 0.0 }
 0x1d9   :  { %v687_v45 = vsel %vm686_vm0, %v685_v43, 0.0  ;;  %836 = vadd.xlane.f32.xlu1 %v835_v31 }
 0x1da   :  { %688 = vadd.xlane.f32.xlu0 %v687_v45 }
 0x1db   :  { %v753_v28 = vld [vmem:[#allocation4 + $0x8] sm:$0xf] }
 0x1de   :  { %704 = vadd.xlane.f32.xlu0 %v703_v46 }
 0x263   :  { %v689_v15 = vpop.xlane.xlu0 %688 }
 0x264   :  { %1104 = vrsqrt.f32 %v689_v15  ;;  %vm692_vm2 = vcmp.eq.f32.partialorder %v689_v15, inf  ;;  %v695_v18 = vand.u32 2147483648, %v689_v15  ;;  %vm694_vm3 = vcmp.eq.f32.partialorder %v689_v15, 0.0 }
 0x267   :  { %v705_v36 = vpop.xlane.xlu0 %704 }
 0x268   :  { %v706_v38 = vmax.f32 %v705_v36, 1e-16 }
 0x271   :  { %v1105_v16 = vpop.eup %1104 }
 0x272   :  { %v691_v17 = vmul.f32 %v1105_v16, %v689_v15 }
 0x274   :  { %v693_v19 = vsel %vm692_vm2, %v689_v15, %v691_v17 }
 0x275   :  { %v696_v20 = vsel %vm694_vm3, %v695_v18, %v693_v19 }
 0x276   :  { %v697_v21 = vadd.f32 1e-07, %v696_v20 }
 0x278   :  { %1106 = vrcp.f32 %v697_v21 }
 0x279   :  { %1108 = vrsqrt.f32 %v706_v38 }
 0x285   :  { %v1107_v22 = vpop.eup %1106 }
 0x286   :  { %v699_v23 = vmul.f32 %v1107_v22, %v1294_v42  ;;  %v1109_v39 = vpop.eup %1108 }
 0x287   :  { %v708_v40 = vmul.f32 %v1109_v39, %v1292_v41 }
 0x288   :  { %v710_v24 = vrot.slane %v699_v23, 4 }
 0x28a   :  { %v747_v25 = vmul.f32 %v1103_v12, %v710_v24  ;;  %v712_v42 = vmul.f32 %v710_v24, %v708_v40 }
 0x28c   :  { %749 = vst [vmem:[#allocation4] sm:$0xf] %v747_v25  ;;  %v830_v26 = vmul.f32 %v747_v25, %v1289_v37  ;;  %v713_v43 = vsel %vm702_vm1, %v712_v42, 0.0  ;;  %v837_v37 = vpop.xlane.xlu1 %836 }
 0x28e   :  { %v831_v27 = vsel %vm702_vm1, %v830_v26, 0.0 }
 0x28f   :  { %832 = vadd.xlane.f32.xlu0 %v831_v27 }
 0x293   :  { %v752_v29 = vld [vmem:[#allocation4] sm:$0xff] }
 0x294   :  { %1035 = vmatprep.mubr.f32.mxu1 %v752_v29 }
 0x295   :  { %1036 = vmatmul.mubr.f32.vlgmr.msra.gmra.mxu1 %v753_v28 }
 0x318   :  { %v833_v49 = vpop.xlane.xlu0 %832 }
 0x355   :  { %v1037_v32 = vpop.f32.mrf.mxu1 }
 0x357   :  { %v821_v33 = vpop.f32.mrf.mxu1 }
 0x358   :  { %v839_v34 = vmul.f32 2.0, %v821_v33  ;;  %v838_v50 = vsub.f32 %v821_v33, %v833_v49 }
 0x35a   :  { %v841_v35 = vrot.slane %v839_v34, 4 }
 0x35c   :  { %842 = vrot.lane.b32.xlu1 %v841_v35, %s1219_s8  ;;  %s1221_s8 = smov [#allocation13]  }
 0x35d   :  { %s882_s29 = sshll.u32 %s1221_s8, 4  ;;  %s883_s29 = int_to_ptr.vmem [resolvable:$true] %s882_s29 }
 0x35e   :  { %s1186_s30 = scalar_lea.vmem %s883_s29, 16  ;;  %s1190_s6 = scalar_lea.vmem %s883_s29, 32 }
 0x35f   :  { %p1187_p1 = scmp.ne.s32.totalorder %s883_s29, %s1186_s30  ;;  %p1191_p2 = scmp.lt.s32.totalorder %s883_s29, %s883_s29 }
 0x360   :  { %p1192_p3 = scmp.lt.s32.totalorder %s1190_s6, %s1186_s30 }
 0x362   :  { %p1193_p4 = por %p1192_p3, %p1191_p2 }
 0x364   :  { %p1194_p5 = pnand %p1193_p4, %p1187_p1 }
 0x380   :  { %714 = vadd.xlane.f32.xlu1 %v713_v43 }
 0x3ce   :  { %v843_v44 = vpop.permute.xlu1 %842 }
 0x3cf   :  { %v845_v45 = vsub.f32 %v1037_v32, %v843_v44 }
 0x3d1   :  { %v846_v46 = vadd.f32 %v845_v45, %v837_v37 }
 0x3d3   :  { %v847_v47 = vmax.f32 %v846_v46, 1e-16 }
 0x3d5   :  { %1110 = vrsqrt.f32 %v847_v47 }
 0x3e2   :  { %v1111_v48 = vpop.eup %1110 }
 0x3e3   :  { %850 = vrot.lane.b32.xlu0 %v1111_v48, %s1220_s4 }
 0x409   :  { %v715_v55 = vpop.xlane.xlu1 %714 }
 0x40a   :  { %v854_v56 = vmul.f32 1.442695, %v715_v55 }
 0x455   :  { %v851_v51 = vpop.permute.xlu0 %850 }
 0x456   :  { %v853_v52 = vmul.f32 %v851_v51, %v838_v50 }
 0x458   :  { %v856_v53 = vmul.f32 1.442695, %v853_v52 }
 0x45a   :  { %1112 = vpow2.f32 %v856_v53 }
 0x45b   :  { %1114 = vpow2.f32 %v854_v56 }
 0x467   :  { %v1113_v41 = vpop.eup %1112 }
 0x468   :  { %v859_v54 = vsel %vm858_vm4, %v1113_v41, 0.0  ;;  %v1115_v57 = vpop.eup %1114 }
 0x469   :  { %860 = vadd.xlane.f32.xlu0 %v859_v54 }
 0x4f2   :  { %v861_v58 = vpop.xlane.xlu0 %860 }
 0x4f3   :  { %v862_v59 = vadd.f32 %v1115_v57, %v861_v58 }
 0x4f5   :  { %1116 = vlog2.f32 %v862_v59 }
 0x502   :  { %v1117_v60 = vpop.eup %1116 }
 0x503   :  { %v864_v61 = vmul.f32 0.6931472, %v1117_v60 }
 0x505   :  { %v865_v62 = vsub.f32 %v864_v61, %v715_v55 }
 0x507   :  { %v866_v63 = vsel %vm702_vm1, %v865_v62, 0.0 }
 0x508   :  { %v867_v0 = vrot.slane %v866_v63, 4 }
 0x50a   :  { %v868_v1 = vadd.f32 %v867_v0, %v866_v63 }
 0x50c   :  { %v869_v2 = vrot.slane %v868_v1, 2 }
 0x50e   :  { %v870_v3 = vadd.f32 %v869_v2, %v868_v1 }
 0x510   :  { %v871_v4 = vrot.slane %v870_v3, 1 }
 0x512   :  { %v872_v5 = vadd.f32 %v871_v4, %v870_v3 }
 0x514   :  { %v873_v6 = vmul.f32 0.25, %v872_v5 }
 0x516   :  { %875 = vst.msk [vmem:[#allocation13] sm:$0x1] %vm874_vm5, %v873_v6 }
 0x517   :  { %1197 = shalt.err (!%p1194_p5)
}
 0x518   :  { %885 = dma.vmem_to_hbm [thread:$0]  %s883_s29, 16, %s1335_s5, [#allocation7]  }
 0x519   :  { %1212 = dma.done.wait [#allocation7], 16  }
 0x51a   :  { %1213 = vsyncadd [#allocation7], 4294967280 }
 0x51b   :  { %889 = vsyncpa [#allocation6], 1 }
 0x51c   :  { %890 = vsyncpa [#allocation11], 1 }
 0x51d   :  { %891 = vsyncpa [#allocation7], 1 }
 0x51e   :  { %892 = vsyncpa [#allocation8], 1 }

</bundles_post_ra>
